<compile_context>
chip_gen: v6e
topology: v6e:2x2x1
jax: 0.10.0
libtpu: 0.0.40
codegen_flags: <defaults>
</compile_context>

<pallas_src>
import jax
import jax.numpy as jnp
from jax import lax
from jax.experimental import pallas as pl
from jax.experimental.pallas import tpu as pltpu

# ---------------- static model / problem config ----------------
NUM_USERS = 7
NUM_ITEMS = 63                 # vocab V = NUM_ITEMS + 1
EMB = 32                       # emb_size
DILATIONS = (1, 2, 4)          # dilation_rates
B = 2                          # batch
T = 8                          # item_seq length
T_PRED = 6                     # items_to_predict timesteps
C = 4                          # candidate items per timestep
V = NUM_ITEMS + 1
VP = 128                       # V padded to a full 128-lane vector
NB = len(DILATIONS)
TT = min(T_PRED, T)            # timesteps_to_use
BT = B * T                     # fused batch*time rows
BN_EPS = 1e-5

# ---- row layout of the narrow (last-dim = EMB) parameter slab ----
IT_BASE = 0                                   # item_emb rows [0, 64)
U_BASE = IT_BASE + (NUM_ITEMS + 1)            # user_emb rows [64, 72)
CW_BASE = U_BASE + (NUM_USERS + 1)            # conv tap matrices [72, 360)
MISC_BASE = CW_BASE + NB * 3 * EMB            # conv_b / bn_scale / bn_shift [360, 369)
RN_ROWS = MISC_BASE + 3 * NB
RN_ROWS_PAD = ((RN_ROWS + 7) // 8) * 8        # pad rows to a sublane multiple


def nextitnet_kernel(seq_ref, uid_ref, pn_ref, pw_ref, out_ref, x_ref):
    # ---- fused embedding gather + user*item multiply (16 rows) ----
    # seq_ref: (B, T) int32 in SMEM; uid_ref: (B,) int32 in SMEM.
    # Embedding tables live at the top of the narrow VMEM param slab.
    for b in range(B):
        u_row = pn_ref[pl.ds(U_BASE + uid_ref[b], 1), :]              # (1, E)
        for t in range(T):
            r = b * T + t
            it_row = pn_ref[pl.ds(IT_BASE + seq_ref[b, t], 1), :]     # (1, E)
            x_ref[r:r + 1, :] = u_row * it_row
    x = x_ref[...]                                                    # (BT, E)
    # TODO(synk): nn.Dropout is identity in eval mode; no stochastic dropout.

    # ---- conv-padding / batch-boundary masks, built once ----
    # Timestep-within-batch of every fused row (layout no-op reshape of iota).
    t_row = lax.broadcasted_iota(jnp.int32, (B, T, EMB), 1).reshape(BT, EMB)
    masks = [(t_row >= rate, t_row < T - rate) for rate in DILATIONS]

    # ---- dilated residual-free conv blocks: Conv1d -> ReLU -> BN(eval) ----
    for blk, rate in enumerate(DILATIONS):
        m_lo, m_hi = masks[blk]
        # Zero-padded dilated taps via XLU rolls + masks (masks give the
        # Conv1d zero padding AND keep taps from crossing the batch boundary
        # inside the fused (B*T) slab).
        x_m = jnp.where(m_lo, pltpu.roll(x, rate, 0), 0.0)            # x[t - rate]
        x_p = jnp.where(m_hi, pltpu.roll(x, BT - rate, 0), 0.0)       # x[t + rate]

        base = CW_BASE + 3 * blk * EMB
        w0 = pn_ref[base + 0 * EMB:base + 1 * EMB, :]                 # (E, E)
        w1 = pn_ref[base + 1 * EMB:base + 2 * EMB, :]
        w2 = pn_ref[base + 2 * EMB:base + 3 * EMB, :]

        # Three small (16,32)@(32,32) MXU dots summed in f32 (no lane concat).
        y = jnp.dot(x_m, w0, preferred_element_type=jnp.float32)
        y = y + jnp.dot(x, w1, preferred_element_type=jnp.float32)
        y = y + jnp.dot(x_p, w2, preferred_element_type=jnp.float32)

        y = y + pn_ref[MISC_BASE + blk:MISC_BASE + blk + 1, :]        # conv bias
        y = jnp.maximum(y, 0.0)                                       # ReLU
        x = (y * pn_ref[MISC_BASE + NB + blk:MISC_BASE + NB + blk + 1, :]
             + pn_ref[MISC_BASE + 2 * NB + blk:MISC_BASE + 2 * NB + blk + 1, :])

    # ---- fc_out: (BT, E) @ (E, 128) + bias; lane-dense full-width store ----
    scores = jnp.dot(x, pw_ref[0:EMB, :], preferred_element_type=jnp.float32)
    out_ref[...] = scores + pw_ref[EMB:EMB + 1, :]


def prepare_params(params):
    """One-time offline packing of all parameters into two slabs."""
    scale = params["bn_gamma"] / jnp.sqrt(params["bn_var"] + BN_EPS)
    shift = params["bn_beta"] - params["bn_mean"] * scale
    # Conv weights (NB, E_out, E_in, K) -> per-tap (E_in, E_out) matrices,
    # tap order [t-rate, t, t+rate], stacked along rows.
    cw = jnp.transpose(params["conv_w"], (0, 3, 2, 1)).reshape(NB * 3 * EMB, EMB)
    slab_n = jnp.concatenate(
        [params["item_emb"],        # rows [IT_BASE, U_BASE)
         params["user_emb"],        # rows [U_BASE, CW_BASE)
         cw,                        # rows [CW_BASE, MISC_BASE)
         params["conv_b"],          # rows MISC_BASE + [0, NB)
         scale,                     # rows MISC_BASE + [NB, 2NB)
         shift],                    # rows MISC_BASE + [2NB, 3NB)
        axis=0).astype(jnp.float32)
    if RN_ROWS_PAD > RN_ROWS:
        slab_n = jnp.pad(slab_n, ((0, RN_ROWS_PAD - RN_ROWS), (0, 0)))
    # fc weight (transposed) + bias; V padded to 128 lanes.
    slab_w = jnp.zeros((EMB + 1, VP), jnp.float32)
    slab_w = slab_w.at[0:EMB, 0:V].set(params["fc_w"].T)
    slab_w = slab_w.at[EMB, 0:V].set(params["fc_b"])
    return {"slab_n": slab_n, "slab_w": slab_w}


@jax.jit
def nextitnet_forward(packed, item_seq, items_to_predict, user_ids):
    scores = pl.pallas_call(
        nextitnet_kernel,
        out_shape=jax.ShapeDtypeStruct((BT, VP), jnp.float32),
        in_specs=[
            pl.BlockSpec(memory_space=pltpu.MemorySpace.SMEM),    # item_seq (B,T) i32
            pl.BlockSpec(memory_space=pltpu.MemorySpace.SMEM),    # user_ids (B,)  i32
            pl.BlockSpec(memory_space=pltpu.MemorySpace.VMEM),    # narrow param slab
            pl.BlockSpec(memory_space=pltpu.MemorySpace.VMEM),    # wide fc slab
        ],
        out_specs=pl.BlockSpec(memory_space=pltpu.MemorySpace.VMEM),
        scratch_shapes=[pltpu.VMEM((BT, EMB), jnp.float32)],      # gathered x
    )(item_seq, user_ids, packed["slab_n"], packed["slab_w"])

    # Epilogue glue: last TT timesteps + torch.gather(scores, -1, idx), done
    # wrapper-side so the kernel output stays a lane-dense (BT, 128) slab.
    s_last = scores.reshape(B, T, VP)[:, T - TT:, :V]              # (B, TT, V)
    idx = items_to_predict[:, -TT:, :]                             # (B, TT, C)
    return jnp.take_along_axis(s_last, idx, axis=-1)               # (B, TT, C)


def init_params(key):
    ks = jax.random.split(key, 10)
    p = {}
    p["user_emb"] = 0.5 * jax.random.normal(ks[0], (NUM_USERS + 1, EMB), jnp.float32)
    p["item_emb"] = 0.5 * jax.random.normal(ks[1], (NUM_ITEMS + 1, EMB), jnp.float32)
    p["conv_w"] = 0.1 * jax.random.normal(ks[2], (NB, EMB, EMB, 3), jnp.float32)  # (E_out, E_in, K)
    p["conv_b"] = 0.1 * jax.random.normal(ks[3], (NB, EMB), jnp.float32)
    p["bn_gamma"] = 1.0 + 0.1 * jax.random.normal(ks[4], (NB, EMB), jnp.float32)
    p["bn_beta"] = 0.1 * jax.random.normal(ks[5], (NB, EMB), jnp.float32)
    p["bn_mean"] = 0.1 * jax.random.normal(ks[6], (NB, EMB), jnp.float32)
    p["bn_var"] = jax.random.uniform(ks[7], (NB, EMB), jnp.float32, 0.5, 1.5)
    p["fc_w"] = 0.1 * jax.random.normal(ks[8], (V, EMB), jnp.float32)              # (V, E)
    p["fc_b"] = 0.1 * jax.random.normal(ks[9], (V,), jnp.float32)
    return p


def reference_forward(params, item_seq, items_to_predict, user_ids):
    # Pure-JAX reference mirroring the PyTorch forward (eval mode).
    u = params["user_emb"][user_ids]                     # (B, E)
    it = params["item_emb"][item_seq]                    # (B, T, E)
    x = u[:, None, :] * it                               # (B, T, E)
    scale = params["bn_gamma"] / jnp.sqrt(params["bn_var"] + BN_EPS)
    shift = params["bn_beta"] - params["bn_mean"] * scale
    for blk, rate in enumerate(DILATIONS):
        W = params["conv_w"][blk]                        # (E_out, E_in, 3)
        xp = jnp.pad(x, ((0, 0), (rate, rate), (0, 0)))
        y = (xp[:, 0:T] @ W[:, :, 0].T
             + xp[:, rate:rate + T] @ W[:, :, 1].T
             + xp[:, 2 * rate:2 * rate + T] @ W[:, :, 2].T
             + params["conv_b"][blk])
        y = jnp.maximum(y, 0.0)
        x = y * scale[blk] + shift[blk]
    scores = x @ params["fc_w"].T + params["fc_b"]       # (B, T, V)
    s_last = scores[:, T - TT:, :]
    idx = items_to_predict[:, -TT:, :]
    return jnp.take_along_axis(s_last, idx, axis=-1)


if __name__ == "__main__":
    key = jax.random.PRNGKey(0)
    k_par, k_seq, k_usr, k_pred = jax.random.split(key, 4)
    params = init_params(k_par)
    packed = prepare_params(params)   # one-time packing, outside the per-call path

    item_seq = jax.random.randint(k_seq, (B, T), 0, NUM_ITEMS + 1, jnp.int32)
    user_ids = jax.random.randint(k_usr, (B,), 0, NUM_USERS + 1, jnp.int32)
    items_to_predict = jax.random.randint(k_pred, (B, T_PRED, C), 0, V, jnp.int32)

    out = nextitnet_forward(packed, item_seq, items_to_predict, user_ids)
    out = jax.block_until_ready(out)

    ref = reference_forward(params, item_seq, items_to_predict, user_ids)
    assert out.shape == (B, TT, C), out.shape
    assert jnp.allclose(out, ref, rtol=1e-4, atol=1e-4), (out, ref)
    print("KERNEL_OK")
</pallas_src>

<mosaic_0001>
module attributes {stable_mosaic.version = 11 : i64} {
  func.func @nextitnet_kernel(%arg0: memref<2x8xi32, #tpu.memory_space<smem>>, %arg1: memref<2xi32, #tpu.memory_space<smem>>, %arg2: memref<376x32xf32, #tpu.memory_space<vmem>>, %arg3: memref<33x128xf32, #tpu.memory_space<vmem>>, %arg4: memref<16x128xf32, #tpu.memory_space<vmem>>, %arg5: memref<16x32xf32, #tpu.memory_space<vmem>>) attributes {dimension_semantics = [], scalar_prefetch = 0 : i64, scratch_operands = 1 : i64, tpu.core_type = #tpu.core_type<tc>} {
    %c0 = arith.constant 0 : index
    %0 = memref.load %arg1[%c0] : memref<2xi32, #tpu.memory_space<smem>>
    %c64_i32 = arith.constant 64 : i32
    %1 = arith.addi %c64_i32, %0 : i32
    %2 = arith.index_cast %1 : i32 to index
    %c0_0 = arith.constant 0 : index
    %3 = vector.load %arg2[%2, %c0_0] : memref<376x32xf32, #tpu.memory_space<vmem>>, vector<1x32xf32>
    %c0_1 = arith.constant 0 : index
    %c0_2 = arith.constant 0 : index
    %4 = memref.load %arg0[%c0_1, %c0_2] : memref<2x8xi32, #tpu.memory_space<smem>>
    %c0_i32 = arith.constant 0 : i32
    %5 = arith.addi %c0_i32, %4 : i32
    %6 = arith.index_cast %5 : i32 to index
    %c0_3 = arith.constant 0 : index
    %7 = vector.load %arg2[%6, %c0_3] : memref<376x32xf32, #tpu.memory_space<vmem>>, vector<1x32xf32>
    %8 = arith.mulf %3, %7 : vector<1x32xf32>
    %c0_4 = arith.constant 0 : index
    %c0_5 = arith.constant 0 : index
    %9 = vector.load %arg5[%c0_4, %c0_5] : memref<16x32xf32, #tpu.memory_space<vmem>>, vector<1x32xf32>
    tpu.vector_store %arg5[%c0_4, %c0_5], %8 {strides = array<i32>} : memref<16x32xf32, #tpu.memory_space<vmem>>, vector<1x32xf32>,
    %c0_6 = arith.constant 0 : index
    %c1 = arith.constant 1 : index
    %10 = memref.load %arg0[%c0_6, %c1] : memref<2x8xi32, #tpu.memory_space<smem>>
    %c0_i32_7 = arith.constant 0 : i32
    %11 = arith.addi %c0_i32_7, %10 : i32
    %12 = arith.index_cast %11 : i32 to index
    %c0_8 = arith.constant 0 : index
    %13 = vector.load %arg2[%12, %c0_8] : memref<376x32xf32, #tpu.memory_space<vmem>>, vector<1x32xf32>
    %14 = arith.mulf %3, %13 : vector<1x32xf32>
    %c1_9 = arith.constant 1 : index
    %c0_10 = arith.constant 0 : index
    %15 = vector.load %arg5[%c1_9, %c0_10] : memref<16x32xf32, #tpu.memory_space<vmem>>, vector<1x32xf32>
    tpu.vector_store %arg5[%c1_9, %c0_10], %14 {strides = array<i32>} : memref<16x32xf32, #tpu.memory_space<vmem>>, vector<1x32xf32>,
    %c0_11 = arith.constant 0 : index
    %c2 = arith.constant 2 : index
    %16 = memref.load %arg0[%c0_11, %c2] : memref<2x8xi32, #tpu.memory_space<smem>>
    %c0_i32_12 = arith.constant 0 : i32
    %17 = arith.addi %c0_i32_12, %16 : i32
    %18 = arith.index_cast %17 : i32 to index
    %c0_13 = arith.constant 0 : index
    %19 = vector.load %arg2[%18, %c0_13] : memref<376x32xf32, #tpu.memory_space<vmem>>, vector<1x32xf32>
    %20 = arith.mulf %3, %19 : vector<1x32xf32>
    %c2_14 = arith.constant 2 : index
    %c0_15 = arith.constant 0 : index
    %21 = vector.load %arg5[%c2_14, %c0_15] : memref<16x32xf32, #tpu.memory_space<vmem>>, vector<1x32xf32>
    tpu.vector_store %arg5[%c2_14, %c0_15], %20 {strides = array<i32>} : memref<16x32xf32, #tpu.memory_space<vmem>>, vector<1x32xf32>,
    %c0_16 = arith.constant 0 : index
    %c3 = arith.constant 3 : index
    %22 = memref.load %arg0[%c0_16, %c3] : memref<2x8xi32, #tpu.memory_space<smem>>
    %c0_i32_17 = arith.constant 0 : i32
    %23 = arith.addi %c0_i32_17, %22 : i32
    %24 = arith.index_cast %23 : i32 to index
    %c0_18 = arith.constant 0 : index
    %25 = vector.load %arg2[%24, %c0_18] : memref<376x32xf32, #tpu.memory_space<vmem>>, vector<1x32xf32>
    %26 = arith.mulf %3, %25 : vector<1x32xf32>
    %c3_19 = arith.constant 3 : index
    %c0_20 = arith.constant 0 : index
    %27 = vector.load %arg5[%c3_19, %c0_20] : memref<16x32xf32, #tpu.memory_space<vmem>>, vector<1x32xf32>
    tpu.vector_store %arg5[%c3_19, %c0_20], %26 {strides = array<i32>} : memref<16x32xf32, #tpu.memory_space<vmem>>, vector<1x32xf32>,
    %c0_21 = arith.constant 0 : index
    %c4 = arith.constant 4 : index
    %28 = memref.load %arg0[%c0_21, %c4] : memref<2x8xi32, #tpu.memory_space<smem>>
    %c0_i32_22 = arith.constant 0 : i32
    %29 = arith.addi %c0_i32_22, %28 : i32
    %30 = arith.index_cast %29 : i32 to index
    %c0_23 = arith.constant 0 : index
    %31 = vector.load %arg2[%30, %c0_23] : memref<376x32xf32, #tpu.memory_space<vmem>>, vector<1x32xf32>
    %32 = arith.mulf %3, %31 : vector<1x32xf32>
    %c4_24 = arith.constant 4 : index
    %c0_25 = arith.constant 0 : index
    %33 = vector.load %arg5[%c4_24, %c0_25] : memref<16x32xf32, #tpu.memory_space<vmem>>, vector<1x32xf32>
    tpu.vector_store %arg5[%c4_24, %c0_25], %32 {strides = array<i32>} : memref<16x32xf32, #tpu.memory_space<vmem>>, vector<1x32xf32>,
    %c0_26 = arith.constant 0 : index
    %c5 = arith.constant 5 : index
    %34 = memref.load %arg0[%c0_26, %c5] : memref<2x8xi32, #tpu.memory_space<smem>>
    %c0_i32_27 = arith.constant 0 : i32
    %35 = arith.addi %c0_i32_27, %34 : i32
    %36 = arith.index_cast %35 : i32 to index
    %c0_28 = arith.constant 0 : index
    %37 = vector.load %arg2[%36, %c0_28] : memref<376x32xf32, #tpu.memory_space<vmem>>, vector<1x32xf32>
    %38 = arith.mulf %3, %37 : vector<1x32xf32>
    %c5_29 = arith.constant 5 : index
    %c0_30 = arith.constant 0 : index
    %39 = vector.load %arg5[%c5_29, %c0_30] : memref<16x32xf32, #tpu.memory_space<vmem>>, vector<1x32xf32>
    tpu.vector_store %arg5[%c5_29, %c0_30], %38 {strides = array<i32>} : memref<16x32xf32, #tpu.memory_space<vmem>>, vector<1x32xf32>,
    %c0_31 = arith.constant 0 : index
    %c6 = arith.constant 6 : index
    %40 = memref.load %arg0[%c0_31, %c6] : memref<2x8xi32, #tpu.memory_space<smem>>
    %c0_i32_32 = arith.constant 0 : i32
    %41 = arith.addi %c0_i32_32, %40 : i32
    %42 = arith.index_cast %41 : i32 to index
    %c0_33 = arith.constant 0 : index
    %43 = vector.load %arg2[%42, %c0_33] : memref<376x32xf32, #tpu.memory_space<vmem>>, vector<1x32xf32>
    %44 = arith.mulf %3, %43 : vector<1x32xf32>
    %c6_34 = arith.constant 6 : index
    %c0_35 = arith.constant 0 : index
    %45 = vector.load %arg5[%c6_34, %c0_35] : memref<16x32xf32, #tpu.memory_space<vmem>>, vector<1x32xf32>
    tpu.vector_store %arg5[%c6_34, %c0_35], %44 {strides = array<i32>} : memref<16x32xf32, #tpu.memory_space<vmem>>, vector<1x32xf32>,
    %c0_36 = arith.constant 0 : index
    %c7 = arith.constant 7 : index
    %46 = memref.load %arg0[%c0_36, %c7] : memref<2x8xi32, #tpu.memory_space<smem>>
    %c0_i32_37 = arith.constant 0 : i32
    %47 = arith.addi %c0_i32_37, %46 : i32
    %48 = arith.index_cast %47 : i32 to index
    %c0_38 = arith.constant 0 : index
    %49 = vector.load %arg2[%48, %c0_38] : memref<376x32xf32, #tpu.memory_space<vmem>>, vector<1x32xf32>
    %50 = arith.mulf %3, %49 : vector<1x32xf32>
    %c7_39 = arith.constant 7 : index
    %c0_40 = arith.constant 0 : index
    %51 = vector.load %arg5[%c7_39, %c0_40] : memref<16x32xf32, #tpu.memory_space<vmem>>, vector<1x32xf32>
    tpu.vector_store %arg5[%c7_39, %c0_40], %50 {strides = array<i32>} : memref<16x32xf32, #tpu.memory_space<vmem>>, vector<1x32xf32>,
    %c1_41 = arith.constant 1 : index
    %52 = memref.load %arg1[%c1_41] : memref<2xi32, #tpu.memory_space<smem>>
    %c64_i32_42 = arith.constant 64 : i32
    %53 = arith.addi %c64_i32_42, %52 : i32
    %54 = arith.index_cast %53 : i32 to index
    %c0_43 = arith.constant 0 : index
    %55 = vector.load %arg2[%54, %c0_43] : memref<376x32xf32, #tpu.memory_space<vmem>>, vector<1x32xf32>
    %c1_44 = arith.constant 1 : index
    %c0_45 = arith.constant 0 : index
    %56 = memref.load %arg0[%c1_44, %c0_45] : memref<2x8xi32, #tpu.memory_space<smem>>
    %c0_i32_46 = arith.constant 0 : i32
    %57 = arith.addi %c0_i32_46, %56 : i32
    %58 = arith.index_cast %57 : i32 to index
    %c0_47 = arith.constant 0 : index
    %59 = vector.load %arg2[%58, %c0_47] : memref<376x32xf32, #tpu.memory_space<vmem>>, vector<1x32xf32>
    %60 = arith.mulf %55, %59 : vector<1x32xf32>
    %c8 = arith.constant 8 : index
    %c0_48 = arith.constant 0 : index
    %61 = vector.load %arg5[%c8, %c0_48] : memref<16x32xf32, #tpu.memory_space<vmem>>, vector<1x32xf32>
    tpu.vector_store %arg5[%c8, %c0_48], %60 {strides = array<i32>} : memref<16x32xf32, #tpu.memory_space<vmem>>, vector<1x32xf32>,
    %c1_49 = arith.constant 1 : index
    %c1_50 = arith.constant 1 : index
    %62 = memref.load %arg0[%c1_49, %c1_50] : memref<2x8xi32, #tpu.memory_space<smem>>
    %c0_i32_51 = arith.constant 0 : i32
    %63 = arith.addi %c0_i32_51, %62 : i32
    %64 = arith.index_cast %63 : i32 to index
    %c0_52 = arith.constant 0 : index
    %65 = vector.load %arg2[%64, %c0_52] : memref<376x32xf32, #tpu.memory_space<vmem>>, vector<1x32xf32>
    %66 = arith.mulf %55, %65 : vector<1x32xf32>
    %c9 = arith.constant 9 : index
    %c0_53 = arith.constant 0 : index
    %67 = vector.load %arg5[%c9, %c0_53] : memref<16x32xf32, #tpu.memory_space<vmem>>, vector<1x32xf32>
    tpu.vector_store %arg5[%c9, %c0_53], %66 {strides = array<i32>} : memref<16x32xf32, #tpu.memory_space<vmem>>, vector<1x32xf32>,
    %c1_54 = arith.constant 1 : index
    %c2_55 = arith.constant 2 : index
    %68 = memref.load %arg0[%c1_54, %c2_55] : memref<2x8xi32, #tpu.memory_space<smem>>
    %c0_i32_56 = arith.constant 0 : i32
    %69 = arith.addi %c0_i32_56, %68 : i32
    %70 = arith.index_cast %69 : i32 to index
    %c0_57 = arith.constant 0 : index
    %71 = vector.load %arg2[%70, %c0_57] : memref<376x32xf32, #tpu.memory_space<vmem>>, vector<1x32xf32>
    %72 = arith.mulf %55, %71 : vector<1x32xf32>
    %c10 = arith.constant 10 : index
    %c0_58 = arith.constant 0 : index
    %73 = vector.load %arg5[%c10, %c0_58] : memref<16x32xf32, #tpu.memory_space<vmem>>, vector<1x32xf32>
    tpu.vector_store %arg5[%c10, %c0_58], %72 {strides = array<i32>} : memref<16x32xf32, #tpu.memory_space<vmem>>, vector<1x32xf32>,
    %c1_59 = arith.constant 1 : index
    %c3_60 = arith.constant 3 : index
    %74 = memref.load %arg0[%c1_59, %c3_60] : memref<2x8xi32, #tpu.memory_space<smem>>
    %c0_i32_61 = arith.constant 0 : i32
    %75 = arith.addi %c0_i32_61, %74 : i32
    %76 = arith.index_cast %75 : i32 to index
    %c0_62 = arith.constant 0 : index
    %77 = vector.load %arg2[%76, %c0_62] : memref<376x32xf32, #tpu.memory_space<vmem>>, vector<1x32xf32>
    %78 = arith.mulf %55, %77 : vector<1x32xf32>
    %c11 = arith.constant 11 : index
    %c0_63 = arith.constant 0 : index
    %79 = vector.load %arg5[%c11, %c0_63] : memref<16x32xf32, #tpu.memory_space<vmem>>, vector<1x32xf32>
    tpu.vector_store %arg5[%c11, %c0_63], %78 {strides = array<i32>} : memref<16x32xf32, #tpu.memory_space<vmem>>, vector<1x32xf32>,
    %c1_64 = arith.constant 1 : index
    %c4_65 = arith.constant 4 : index
    %80 = memref.load %arg0[%c1_64, %c4_65] : memref<2x8xi32, #tpu.memory_space<smem>>
    %c0_i32_66 = arith.constant 0 : i32
    %81 = arith.addi %c0_i32_66, %80 : i32
    %82 = arith.index_cast %81 : i32 to index
    %c0_67 = arith.constant 0 : index
    %83 = vector.load %arg2[%82, %c0_67] : memref<376x32xf32, #tpu.memory_space<vmem>>, vector<1x32xf32>
    %84 = arith.mulf %55, %83 : vector<1x32xf32>
    %c12 = arith.constant 12 : index
    %c0_68 = arith.constant 0 : index
    %85 = vector.load %arg5[%c12, %c0_68] : memref<16x32xf32, #tpu.memory_space<vmem>>, vector<1x32xf32>
    tpu.vector_store %arg5[%c12, %c0_68], %84 {strides = array<i32>} : memref<16x32xf32, #tpu.memory_space<vmem>>, vector<1x32xf32>,
    %c1_69 = arith.constant 1 : index
    %c5_70 = arith.constant 5 : index
    %86 = memref.load %arg0[%c1_69, %c5_70] : memref<2x8xi32, #tpu.memory_space<smem>>
    %c0_i32_71 = arith.constant 0 : i32
    %87 = arith.addi %c0_i32_71, %86 : i32
    %88 = arith.index_cast %87 : i32 to index
    %c0_72 = arith.constant 0 : index
    %89 = vector.load %arg2[%88, %c0_72] : memref<376x32xf32, #tpu.memory_space<vmem>>, vector<1x32xf32>
    %90 = arith.mulf %55, %89 : vector<1x32xf32>
    %c13 = arith.constant 13 : index
    %c0_73 = arith.constant 0 : index
    %91 = vector.load %arg5[%c13, %c0_73] : memref<16x32xf32, #tpu.memory_space<vmem>>, vector<1x32xf32>
    tpu.vector_store %arg5[%c13, %c0_73], %90 {strides = array<i32>} : memref<16x32xf32, #tpu.memory_space<vmem>>, vector<1x32xf32>,
    %c1_74 = arith.constant 1 : index
    %c6_75 = arith.constant 6 : index
    %92 = memref.load %arg0[%c1_74, %c6_75] : memref<2x8xi32, #tpu.memory_space<smem>>
    %c0_i32_76 = arith.constant 0 : i32
    %93 = arith.addi %c0_i32_76, %92 : i32
    %94 = arith.index_cast %93 : i32 to index
    %c0_77 = arith.constant 0 : index
    %95 = vector.load %arg2[%94, %c0_77] : memref<376x32xf32, #tpu.memory_space<vmem>>, vector<1x32xf32>
    %96 = arith.mulf %55, %95 : vector<1x32xf32>
    %c14 = arith.constant 14 : index
    %c0_78 = arith.constant 0 : index
    %97 = vector.load %arg5[%c14, %c0_78] : memref<16x32xf32, #tpu.memory_space<vmem>>, vector<1x32xf32>
    tpu.vector_store %arg5[%c14, %c0_78], %96 {strides = array<i32>} : memref<16x32xf32, #tpu.memory_space<vmem>>, vector<1x32xf32>,
    %c1_79 = arith.constant 1 : index
    %c7_80 = arith.constant 7 : index
    %98 = memref.load %arg0[%c1_79, %c7_80] : memref<2x8xi32, #tpu.memory_space<smem>>
    %c0_i32_81 = arith.constant 0 : i32
    %99 = arith.addi %c0_i32_81, %98 : i32
    %100 = arith.index_cast %99 : i32 to index
    %c0_82 = arith.constant 0 : index
    %101 = vector.load %arg2[%100, %c0_82] : memref<376x32xf32, #tpu.memory_space<vmem>>, vector<1x32xf32>
    %102 = arith.mulf %55, %101 : vector<1x32xf32>
    %c15 = arith.constant 15 : index
    %c0_83 = arith.constant 0 : index
    %103 = vector.load %arg5[%c15, %c0_83] : memref<16x32xf32, #tpu.memory_space<vmem>>, vector<1x32xf32>
    tpu.vector_store %arg5[%c15, %c0_83], %102 {strides = array<i32>} : memref<16x32xf32, #tpu.memory_space<vmem>>, vector<1x32xf32>,
    %c0_84 = arith.constant 0 : index
    %c0_85 = arith.constant 0 : index
    %104 = vector.load %arg5[%c0_84, %c0_85] : memref<16x32xf32, #tpu.memory_space<vmem>>, vector<16x32xf32>
    %105 = tpu.iota {dimensions = array<i32: 1>} : vector<2x8x32xi32>
    %106 = vector.shape_cast %105 : vector<2x8x32xi32> to vector<16x32xi32>
    %c1_i32 = arith.constant 1 : i32
    %107 = vector.broadcast %c1_i32 : i32 to vector<16x32xi32>
    %108 = arith.cmpi sge, %106, %107 : vector<16x32xi32>
    %c7_i32 = arith.constant 7 : i32
    %109 = vector.broadcast %c7_i32 : i32 to vector<16x32xi32>
    %110 = arith.cmpi slt, %106, %109 : vector<16x32xi32>
    %c2_i32 = arith.constant 2 : i32
    %111 = vector.broadcast %c2_i32 : i32 to vector<16x32xi32>
    %112 = arith.cmpi sge, %106, %111 : vector<16x32xi32>
    %c6_i32 = arith.constant 6 : i32
    %113 = vector.broadcast %c6_i32 : i32 to vector<16x32xi32>
    %114 = arith.cmpi slt, %106, %113 : vector<16x32xi32>
    %c4_i32 = arith.constant 4 : i32
    %115 = vector.broadcast %c4_i32 : i32 to vector<16x32xi32>
    %116 = arith.cmpi sge, %106, %115 : vector<16x32xi32>
    %c4_i32_86 = arith.constant 4 : i32
    %117 = vector.broadcast %c4_i32_86 : i32 to vector<16x32xi32>
    %118 = arith.cmpi slt, %106, %117 : vector<16x32xi32>
    %c1_i32_87 = arith.constant 1 : i32
    %119 = tpu.dynamic_rotate %104 by %c1_i32_87 dim 0 : vector<16x32xf32>, i32 -> vector<16x32xf32>
    %cst = arith.constant 0.000000e+00 : f32
    %120 = vector.broadcast %cst : f32 to vector<16x32xf32>
    %121 = arith.select %108, %119, %120 : vector<16x32xi1>, vector<16x32xf32>
    %c15_i32 = arith.constant 15 : i32
    %122 = tpu.dynamic_rotate %104 by %c15_i32 dim 0 : vector<16x32xf32>, i32 -> vector<16x32xf32>
    %cst_88 = arith.constant 0.000000e+00 : f32
    %123 = vector.broadcast %cst_88 : f32 to vector<16x32xf32>
    %124 = arith.select %110, %122, %123 : vector<16x32xi1>, vector<16x32xf32>
    %c72 = arith.constant 72 : index
    %c0_89 = arith.constant 0 : index
    %125 = vector.load %arg2[%c72, %c0_89] : memref<376x32xf32, #tpu.memory_space<vmem>>, vector<32x32xf32>
    %c104 = arith.constant 104 : index
    %c0_90 = arith.constant 0 : index
    %126 = vector.load %arg2[%c104, %c0_90] : memref<376x32xf32, #tpu.memory_space<vmem>>, vector<32x32xf32>
    %c136 = arith.constant 136 : index
    %c0_91 = arith.constant 0 : index
    %127 = vector.load %arg2[%c136, %c0_91] : memref<376x32xf32, #tpu.memory_space<vmem>>, vector<32x32xf32>
    %cst_92 = arith.constant dense<0.000000e+00> : vector<16x32xf32>
    %128 = tpu.matmul %121, %125, %cst_92 {dimension_numbers = #tpu.dot_dimension_numbers<[1], [0], [0], [1], [0, 0, 1, 1], [], []>} : vector<16x32xf32>, vector<32x32xf32>, vector<16x32xf32> -> vector<16x32xf32>
    %cst_93 = arith.constant dense<0.000000e+00> : vector<16x32xf32>
    %129 = tpu.matmul %104, %126, %cst_93 {dimension_numbers = #tpu.dot_dimension_numbers<[1], [0], [0], [1], [0, 0, 1, 1], [], []>} : vector<16x32xf32>, vector<32x32xf32>, vector<16x32xf32> -> vector<16x32xf32>
    %130 = arith.addf %128, %129 : vector<16x32xf32>
    %cst_94 = arith.constant dense<0.000000e+00> : vector<16x32xf32>
    %131 = tpu.matmul %124, %127, %cst_94 {dimension_numbers = #tpu.dot_dimension_numbers<[1], [0], [0], [1], [0, 0, 1, 1], [], []>} : vector<16x32xf32>, vector<32x32xf32>, vector<16x32xf32> -> vector<16x32xf32>
    %132 = arith.addf %130, %131 : vector<16x32xf32>
    %c360 = arith.constant 360 : index
    %c0_95 = arith.constant 0 : index
    %133 = vector.load %arg2[%c360, %c0_95] : memref<376x32xf32, #tpu.memory_space<vmem>>, vector<1x32xf32>
    %134 = vector.broadcast %133 : vector<1x32xf32> to vector<16x32xf32>
    %135 = arith.addf %132, %134 : vector<16x32xf32>
    %cst_96 = arith.constant 0.000000e+00 : f32
    %136 = vector.broadcast %cst_96 : f32 to vector<16x32xf32>
    %137 = arith.maximumf %135, %136 : vector<16x32xf32>
    %c363 = arith.constant 363 : index
    %c0_97 = arith.constant 0 : index
    %138 = vector.load %arg2[%c363, %c0_97] : memref<376x32xf32, #tpu.memory_space<vmem>>, vector<1x32xf32>
    %139 = vector.broadcast %138 : vector<1x32xf32> to vector<16x32xf32>
    %140 = arith.mulf %137, %139 : vector<16x32xf32>
    %c366 = arith.constant 366 : index
    %c0_98 = arith.constant 0 : index
    %141 = vector.load %arg2[%c366, %c0_98] : memref<376x32xf32, #tpu.memory_space<vmem>>, vector<1x32xf32>
    %142 = vector.broadcast %141 : vector<1x32xf32> to vector<16x32xf32>
    %143 = arith.addf %140, %142 : vector<16x32xf32>
    %c2_i32_99 = arith.constant 2 : i32
    %144 = tpu.dynamic_rotate %143 by %c2_i32_99 dim 0 : vector<16x32xf32>, i32 -> vector<16x32xf32>
    %cst_100 = arith.constant 0.000000e+00 : f32
    %145 = vector.broadcast %cst_100 : f32 to vector<16x32xf32>
    %146 = arith.select %112, %144, %145 : vector<16x32xi1>, vector<16x32xf32>
    %c14_i32 = arith.constant 14 : i32
    %147 = tpu.dynamic_rotate %143 by %c14_i32 dim 0 : vector<16x32xf32>, i32 -> vector<16x32xf32>
    %cst_101 = arith.constant 0.000000e+00 : f32
    %148 = vector.broadcast %cst_101 : f32 to vector<16x32xf32>
    %149 = arith.select %114, %147, %148 : vector<16x32xi1>, vector<16x32xf32>
    %c168 = arith.constant 168 : index
    %c0_102 = arith.constant 0 : index
    %150 = vector.load %arg2[%c168, %c0_102] : memref<376x32xf32, #tpu.memory_space<vmem>>, vector<32x32xf32>
    %c200 = arith.constant 200 : index
    %c0_103 = arith.constant 0 : index
    %151 = vector.load %arg2[%c200, %c0_103] : memref<376x32xf32, #tpu.memory_space<vmem>>, vector<32x32xf32>
    %c232 = arith.constant 232 : index
    %c0_104 = arith.constant 0 : index
    %152 = vector.load %arg2[%c232, %c0_104] : memref<376x32xf32, #tpu.memory_space<vmem>>, vector<32x32xf32>
    %cst_105 = arith.constant dense<0.000000e+00> : vector<16x32xf32>
    %153 = tpu.matmul %146, %150, %cst_105 {dimension_numbers = #tpu.dot_dimension_numbers<[1], [0], [0], [1], [0, 0, 1, 1], [], []>} : vector<16x32xf32>, vector<32x32xf32>, vector<16x32xf32> -> vector<16x32xf32>
    %cst_106 = arith.constant dense<0.000000e+00> : vector<16x32xf32>
    %154 = tpu.matmul %143, %151, %cst_106 {dimension_numbers = #tpu.dot_dimension_numbers<[1], [0], [0], [1], [0, 0, 1, 1], [], []>} : vector<16x32xf32>, vector<32x32xf32>, vector<16x32xf32> -> vector<16x32xf32>
    %155 = arith.addf %153, %154 : vector<16x32xf32>
    %cst_107 = arith.constant dense<0.000000e+00> : vector<16x32xf32>
    %156 = tpu.matmul %149, %152, %cst_107 {dimension_numbers = #tpu.dot_dimension_numbers<[1], [0], [0], [1], [0, 0, 1, 1], [], []>} : vector<16x32xf32>, vector<32x32xf32>, vector<16x32xf32> -> vector<16x32xf32>
    %157 = arith.addf %155, %156 : vector<16x32xf32>
    %c361 = arith.constant 361 : index
    %c0_108 = arith.constant 0 : index
    %158 = vector.load %arg2[%c361, %c0_108] : memref<376x32xf32, #tpu.memory_space<vmem>>, vector<1x32xf32>
    %159 = vector.broadcast %158 : vector<1x32xf32> to vector<16x32xf32>
    %160 = arith.addf %157, %159 : vector<16x32xf32>
    %cst_109 = arith.constant 0.000000e+00 : f32
    %161 = vector.broadcast %cst_109 : f32 to vector<16x32xf32>
    %162 = arith.maximumf %160, %161 : vector<16x32xf32>
    %c364 = arith.constant 364 : index
    %c0_110 = arith.constant 0 : index
    %163 = vector.load %arg2[%c364, %c0_110] : memref<376x32xf32, #tpu.memory_space<vmem>>, vector<1x32xf32>
    %164 = vector.broadcast %163 : vector<1x32xf32> to vector<16x32xf32>
    %165 = arith.mulf %162, %164 : vector<16x32xf32>
    %c367 = arith.constant 367 : index
    %c0_111 = arith.constant 0 : index
    %166 = vector.load %arg2[%c367, %c0_111] : memref<376x32xf32, #tpu.memory_space<vmem>>, vector<1x32xf32>
    %167 = vector.broadcast %166 : vector<1x32xf32> to vector<16x32xf32>
    %168 = arith.addf %165, %167 : vector<16x32xf32>
    %c4_i32_112 = arith.constant 4 : i32
    %169 = tpu.dynamic_rotate %168 by %c4_i32_112 dim 0 : vector<16x32xf32>, i32 -> vector<16x32xf32>
    %cst_113 = arith.constant 0.000000e+00 : f32
    %170 = vector.broadcast %cst_113 : f32 to vector<16x32xf32>
    %171 = arith.select %116, %169, %170 : vector<16x32xi1>, vector<16x32xf32>
    %c12_i32 = arith.constant 12 : i32
    %172 = tpu.dynamic_rotate %168 by %c12_i32 dim 0 : vector<16x32xf32>, i32 -> vector<16x32xf32>
    %cst_114 = arith.constant 0.000000e+00 : f32
    %173 = vector.broadcast %cst_114 : f32 to vector<16x32xf32>
    %174 = arith.select %118, %172, %173 : vector<16x32xi1>, vector<16x32xf32>
    %c264 = arith.constant 264 : index
    %c0_115 = arith.constant 0 : index
    %175 = vector.load %arg2[%c264, %c0_115] : memref<376x32xf32, #tpu.memory_space<vmem>>, vector<32x32xf32>
    %c296 = arith.constant 296 : index
    %c0_116 = arith.constant 0 : index
    %176 = vector.load %arg2[%c296, %c0_116] : memref<376x32xf32, #tpu.memory_space<vmem>>, vector<32x32xf32>
    %c328 = arith.constant 328 : index
    %c0_117 = arith.constant 0 : index
    %177 = vector.load %arg2[%c328, %c0_117] : memref<376x32xf32, #tpu.memory_space<vmem>>, vector<32x32xf32>
    %cst_118 = arith.constant dense<0.000000e+00> : vector<16x32xf32>
    %178 = tpu.matmul %171, %175, %cst_118 {dimension_numbers = #tpu.dot_dimension_numbers<[1], [0], [0], [1], [0, 0, 1, 1], [], []>} : vector<16x32xf32>, vector<32x32xf32>, vector<16x32xf32> -> vector<16x32xf32>
    %cst_119 = arith.constant dense<0.000000e+00> : vector<16x32xf32>
    %179 = tpu.matmul %168, %176, %cst_119 {dimension_numbers = #tpu.dot_dimension_numbers<[1], [0], [0], [1], [0, 0, 1, 1], [], []>} : vector<16x32xf32>, vector<32x32xf32>, vector<16x32xf32> -> vector<16x32xf32>
    %180 = arith.addf %178, %179 : vector<16x32xf32>
    %cst_120 = arith.constant dense<0.000000e+00> : vector<16x32xf32>
    %181 = tpu.matmul %174, %177, %cst_120 {dimension_numbers = #tpu.dot_dimension_numbers<[1], [0], [0], [1], [0, 0, 1, 1], [], []>} : vector<16x32xf32>, vector<32x32xf32>, vector<16x32xf32> -> vector<16x32xf32>
    %182 = arith.addf %180, %181 : vector<16x32xf32>
    %c362 = arith.constant 362 : index
    %c0_121 = arith.constant 0 : index
    %183 = vector.load %arg2[%c362, %c0_121] : memref<376x32xf32, #tpu.memory_space<vmem>>, vector<1x32xf32>
    %184 = vector.broadcast %183 : vector<1x32xf32> to vector<16x32xf32>
    %185 = arith.addf %182, %184 : vector<16x32xf32>
    %cst_122 = arith.constant 0.000000e+00 : f32
    %186 = vector.broadcast %cst_122 : f32 to vector<16x32xf32>
    %187 = arith.maximumf %185, %186 : vector<16x32xf32>
    %c365 = arith.constant 365 : index
    %c0_123 = arith.constant 0 : index
    %188 = vector.load %arg2[%c365, %c0_123] : memref<376x32xf32, #tpu.memory_space<vmem>>, vector<1x32xf32>
    %189 = vector.broadcast %188 : vector<1x32xf32> to vector<16x32xf32>
    %190 = arith.mulf %187, %189 : vector<16x32xf32>
    %c368 = arith.constant 368 : index
    %c0_124 = arith.constant 0 : index
    %191 = vector.load %arg2[%c368, %c0_124] : memref<376x32xf32, #tpu.memory_space<vmem>>, vector<1x32xf32>
    %192 = vector.broadcast %191 : vector<1x32xf32> to vector<16x32xf32>
    %193 = arith.addf %190, %192 : vector<16x32xf32>
    %c0_125 = arith.constant 0 : index
    %c0_126 = arith.constant 0 : index
    %194 = vector.load %arg3[%c0_125, %c0_126] : memref<33x128xf32, #tpu.memory_space<vmem>>, vector<32x128xf32>
    %cst_127 = arith.constant dense<0.000000e+00> : vector<16x128xf32>
    %195 = tpu.matmul %193, %194, %cst_127 {dimension_numbers = #tpu.dot_dimension_numbers<[1], [0], [0], [1], [0, 0, 1, 1], [], []>} : vector<16x32xf32>, vector<32x128xf32>, vector<16x128xf32> -> vector<16x128xf32>
    %c32 = arith.constant 32 : index
    %c0_128 = arith.constant 0 : index
    %196 = vector.load %arg3[%c32, %c0_128] : memref<33x128xf32, #tpu.memory_space<vmem>>, vector<1x128xf32>
    %197 = vector.broadcast %196 : vector<1x128xf32> to vector<16x128xf32>
    %198 = arith.addf %195, %197 : vector<16x128xf32>
    %c0_129 = arith.constant 0 : index
    %c0_130 = arith.constant 0 : index
    %199 = vector.load %arg4[%c0_129, %c0_130] : memref<16x128xf32, #tpu.memory_space<vmem>>, vector<16x128xf32>
    tpu.vector_store %arg4[%c0_129, %c0_130], %198 {strides = array<i32>} : memref<16x128xf32, #tpu.memory_space<vmem>>, vector<16x128xf32>,
    return
  }
}

</mosaic_0001>

<bundles_post_ra>
// kernel: nextitnet_forward.1
= control target key start
LH: loop header
LB: loop body
LE: loop exit
PB: predicated region body
PF: predicated region fallthrough
CT: control target
= control target key end

     0   :  { %9 = vsyncpa [#allocation4], 0  ;;  %s1739_s0 = inlined_call_operand.vmem [shape: s32[2,8], index: 0, kind: input, shape index: {}]   ;;  %s1740_s1 = inlined_call_operand.vmem [shape: s32[2], index: 1, kind: input, shape index: {}]   ;;  %s1741_s2 = inlined_call_operand.vmem [shape: f32[376,32], index: 2, kind: input, shape index: {}]   ;;  %s1742_s3 = inlined_call_operand.vmem [shape: f32[33,128], index: 3, kind: input, shape index: {}]   ;;  %s1743_s4 = inlined_call_operand.vmem [shape: f32[16,128], index: 4, kind: output, shape index: {}]  }
   0x1   :  { %s17_s17 = sshll.u32 %s1739_s0, 4  ;;  %s18_s17 = int_to_ptr.vmem [resolvable:$true] %s17_s17 }
   0x2   :  { %10 = vsyncpa [#allocation6], 0  ;;  %s27_s20 = sshll.u32 %s1740_s1, 4  ;;  %s1354_s21 = scalar_lea.vmem %s18_s17, 32  ;;  %s28_s20 = int_to_ptr.vmem [resolvable:$true] %s27_s20 }
   0x3   :  { %p1355_p0 = scmp.ne.s32.totalorder %s18_s17, %s1354_s21  ;;  %p1359_p1 = scmp.lt.s32.totalorder %s18_s17, %s18_s17 }
   0x4   :  { %p1360_p2 = scmp.lt.s32.totalorder %s1354_s21, %s1354_s21 }
   0x6   :  { %p1361_p3 = por %p1360_p2, %p1359_p1 }
   0x8   :  { %p1362_p4 = pnand %p1361_p3, %p1355_p0 }
   0xa   :  { %1365 = shalt.err (!%p1362_p4)
}
   0xb   :  { %s1382_s22 = smov [#allocation3]   ;;  %s1366_s23 = scalar_lea.vmem %s28_s20, 16 }
   0xc   :  { %20 = dma.vmem_to_smem %s18_s17, 32, %s1382_s22, [#allocation4]  }
   0xd   :  { %p1367_p5 = scmp.ne.s32.totalorder %s28_s20, %s1366_s23  ;;  %p1371_p6 = scmp.lt.s32.totalorder %s28_s20, %s28_s20 }
   0xe   :  { %p1372_p7 = scmp.lt.s32.totalorder %s1366_s23, %s1366_s23 }
  0x10   :  { %p1373_p8 = por %p1372_p7, %p1371_p6 }
  0x12   :  { %p1374_p9 = pnand %p1373_p8, %p1367_p5 }
  0x14   :  { %1377 = shalt.err (!%p1374_p9)
}
  0x15   :  { %s1383_s0 = smov [#allocation5]  }
  0x16   :  { %30 = dma.vmem_to_smem %s28_s20, 16, %s1383_s0, [#allocation6]  }
  0x17   :  { %1378 = dma.done.wait [#allocation4], 32  }
  0x18   :  { %1379 = vsyncadd [#allocation4], 4294967264 }
  0x19   :  { %1380 = dma.done.wait [#allocation6], 16  }
  0x1a   :  { %1381 = vsyncadd [#allocation6], 4294967280 }
  0x1b   :  { %41 = sfence }
  0x1c   :  { %v161_v0 = vld [vmem:[%s1741_s2 + $0x80] sm:$0xff]  ;;  %v160_v1 = vld [vmem:[%s1741_s2 + $0x78] sm:$0xff]  ;;  %s42_s27 = sld [smem:[#allocation5]]  ;;  %v159_v4 = vld [vmem:[%s1741_s2 + $0x70] sm:$0xff]  ;;  %vm50_vm0 = vcmask 253952   ;;  %vm166_vm1 = vcmask 261120   ;;  %v133_v44 = vlaneseq }
  0x1d   :  { %1242 = vmatprep.subr.mxu0 %v161_v0  ;;  %v157_v2 = vld [vmem:[%s1741_s2 + $0x60] sm:$0xff]  ;;  %v156_v3 = vld [vmem:[%s1741_s2 + $0x58] sm:$0xff]  ;;  %s46_s6 = sld [smem:[#allocation3]]  ;;  %v155_v5 = vld [vmem:[%s1741_s2 + $0x50] sm:$0xff] }
  0x1e   :  { %1243 = vmatpush3.msra.mxu0 %v161_v0  ;;  %1253 = vmatprep.subr.mxu1 %v157_v2  ;;  %s1430_s9 = sld [smem:[#allocation3 + $0x1]]  ;;  %v158_v6 = vld [vmem:[%s1741_s2 + $0x68] sm:$0xff]  ;;  %v1455_v8 = vld [vmem:[%s1741_s2 + $0xa0] sm:$0xff]  ;;  %v1552_v45 = vshrl.u32 %v133_v44, 7  ;;  %v164_v49 = vld [vmem:[%s1741_s2 + $0x98] sm:$0xff] }
  0x1f   :  { %1244 = vmatprep.subr.mxu0 %v160_v1  ;;  %1254 = vmatpush3.msra.mxu1 %v157_v2  ;;  %s1432_s10 = sld [smem:[#allocation3 + $0x2]]  ;;  %v154_v7 = vld [vmem:[%s1741_s2 + $0x48] sm:$0xff]  ;;  %v163_v52 = vld [vmem:[%s1741_s2 + $0x90] sm:$0xff]  ;;  %v455_v62 = vld [vmem:[%s1741_s2 + $0xe0] sm:$0xff] }
  0x20   :  { %1245 = vmatpush3.msra.mxu0 %v160_v1  ;;  %1255 = vmatprep.subr.mxu1 %v156_v3  ;;  %s1440_s15 = sld [smem:[#allocation3 + $0x3]]  ;;  %vm143_vm2 = vcmp.lt.s32.totalorder %v1552_v45, 1  ;;  %vm136_vm3 = vcmp.lt.s32.totalorder %v1552_v45, 7  ;;  %vm135_vm4 = vcmp.ge.s32.totalorder %v1552_v45, 1  ;;  %v162_v59 = vld [vmem:[%s1741_s2 + $0x88] sm:$0xff]  ;;  %v454_v63 = vld [vmem:[%s1741_s2 + $0xd8] sm:$0xff] }
  0x21   :  { %1246 = vmatprep.subr.mxu0 %v159_v4  ;;  %s1442_s16 = sld [smem:[#allocation3 + $0x4]]  ;;  %1256 = vmatpush3.msra.mxu1 %v156_v3  ;;  %v453_v0 = vld [vmem:[%s1741_s2 + $0xd0] sm:$0xff]  ;;  %v451_v1 = vld [vmem:[%s1741_s2 + $0xc0] sm:$0xff]  ;;  %v452_v2 = vld [vmem:[%s1741_s2 + $0xc8] sm:$0xff]  ;;  %vm137_vm5 = vcmp.ge.s32.totalorder %v1552_v45, 2  ;;  %vm437_vm6 = vcmp.lt.s32.totalorder %v1552_v45, 2 }
  0x22   :  { %1247 = vmatpush3.msra.mxu0 %v159_v4  ;;  %s1114_s21 = scalar_lea.vmem %s1741_s2, %s42_s27  ;;  %s1450_s22 = sld [smem:[#allocation3 + $0x5]]  ;;  %1257 = vmatprep.subr.mxu1 %v155_v5  ;;  %v450_v3 = vld [vmem:[%s1741_s2 + $0xb8] sm:$0xff]  ;;  %v459_v4 = vld [vmem:[%s1741_s2 + $0x100] sm:$0xff]  ;;  %vm138_vm7 = vcmp.lt.s32.totalorder %v1552_v45, 6  ;;  %vm140_vm8 = vcmp.lt.s32.totalorder %v1552_v45, 4  ;;  %vm139_vm9 = vcmp.ge.s32.totalorder %v1552_v45, 4 }
  0x23   :  { %1248 = vmatprep.subr.mxu0 %v158_v6  ;;  %v1134_v9 = vld [vmem:[%s1114_s21 + $0x40] sm:$0x1]  ;;  %s47_s25 = scalar_lea.vmem %s1741_s2, %s46_s6  ;;  %s1460_s26 = sld [smem:[#allocation3 + $0x6]]  ;;  %1258 = vmatpush3.msra.mxu1 %v155_v5  ;;  %v449_v5 = vld [vmem:[%s1741_s2 + $0xb0] sm:$0xff]  ;;  %v742_v44 = vld [vmem:[%s1741_s2 + $0x138] sm:$0xff] }
  0x24   :  { %1249 = vmatpush3.msra.mxu0 %v158_v6  ;;  %v48_v10 = vld [vmem:[%s47_s25] sm:$0x1]  ;;  %s53_s29 = scalar_lea.vmem %s1741_s2, %s1430_s9  ;;  %s1466_s30 = sld [smem:[#allocation3 + $0x7]]  ;;  %1259 = vmatprep.subr.mxu1 %v154_v7  ;;  %v448_v6 = vld [vmem:[%s1741_s2 + $0xa8] sm:$0xff] }
  0x25   :  { %v49_v11 = vmul.f32 %v1134_v9, %v48_v10  ;;  %v54_v12 = vld [vmem:[%s53_s29] sm:$0x1]  ;;  %s58_s6 = scalar_lea.vmem %s1741_s2, %s1432_s10  ;;  %1264 = vmatprep.subr.mxu0 %v1455_v8  ;;  %s1473_s8 = sld [smem:[#allocation5 + $0x1]]  ;;  %1260 = vmatpush3.msra.mxu1 %v154_v7  ;;  %v1017_v45 = vld [vmem:[%s1742_s3 + $0x8] sm:$0xff] }
  0x26   :  { %v55_v13 = vmul.f32 %v1134_v9, %v54_v12  ;;  %v59_v14 = vld [vmem:[%s58_s6] sm:$0x1]  ;;  %s63_s12 = scalar_lea.vmem %s1741_s2, %s1440_s15  ;;  %s1479_s13 = sld [smem:[#allocation3 + $0x80]]  ;;  %1275 = vmatprep.subr.mxu1 %v455_v62 }
  0x27   :  { %51 = vst.msk [vmem:[#allocation2] sm:$0x1] %vm50_vm0, %v49_v11  ;;  %v60_v15 = vmul.f32 %v1134_v9, %v59_v14  ;;  %v64_v16 = vld [vmem:[%s63_s12] sm:$0x1]  ;;  %s68_s17 = scalar_lea.vmem %s1741_s2, %s1442_s16  ;;  %s1486_s18 = sld [smem:[#allocation3 + $0x81]] }
  0x28   :  { %56 = vst.msk [vmem:[#allocation2 + $0x1] sm:$0x1] %vm50_vm0, %v55_v13  ;;  %v65_v17 = vmul.f32 %v1134_v9, %v64_v16  ;;  %v69_v18 = vld [vmem:[%s68_s17] sm:$0x1]  ;;  %s73_s15 = scalar_lea.vmem %s1741_s2, %s1450_s22  ;;  %s1493_s21 = sld [smem:[#allocation3 + $0x82]] }
  0x29   :  { %61 = vst.msk [vmem:[#allocation2 + $0x2] sm:$0x1] %vm50_vm0, %v60_v15  ;;  %v70_v19 = vmul.f32 %v1134_v9, %v69_v18  ;;  %v74_v20 = vld [vmem:[%s73_s15] sm:$0x1]  ;;  %s78_s16 = scalar_lea.vmem %s1741_s2, %s1460_s26  ;;  %s1500_s1 = sld [smem:[#allocation3 + $0x83]] }
  0x2a   :  { %66 = vst.msk [vmem:[#allocation2 + $0x3] sm:$0x1] %vm50_vm0, %v65_v17  ;;  %v75_v21 = vmul.f32 %v1134_v9, %v74_v20  ;;  %v79_v22 = vld [vmem:[%s78_s16] sm:$0x1]  ;;  %s83_s25 = scalar_lea.vmem %s1741_s2, %s1466_s30  ;;  %s1148_s27 = sld [smem:[#allocation3 + $0x84]] }
  0x2b   :  { %71 = vst.msk [vmem:[#allocation2 + $0x4] sm:$0x1] %vm50_vm0, %v70_v19  ;;  %v80_v23 = vmul.f32 %v1134_v9, %v79_v22  ;;  %v84_v24 = vld [vmem:[%s83_s25] sm:$0x1]  ;;  %s1124_s26 = scalar_lea.vmem %s1741_s2, %s1473_s8  ;;  %s1149_s5 = sld [smem:[#allocation3 + $0x85]] }
  0x2c   :  { %76 = vst.msk [vmem:[#allocation2 + $0x5] sm:$0x1] %vm50_vm0, %v75_v21  ;;  %v85_v25 = vmul.f32 %v1134_v9, %v84_v24  ;;  %v1143_v26 = vld [vmem:[%s1124_s26 + $0x40] sm:$0x1]  ;;  %s92_s30 = scalar_lea.vmem %s1741_s2, %s1479_s13  ;;  %s1150_s11 = sld [smem:[#allocation3 + $0x86]] }
  0x2d   :  { %81 = vst.msk [vmem:[#allocation2 + $0x6] sm:$0x1] %vm50_vm0, %v80_v23  ;;  %v93_v27 = vld [vmem:[%s92_s30] sm:$0x1]  ;;  %s97_s10 = scalar_lea.vmem %s1741_s2, %s1486_s18  ;;  %s1151_s14 = sld [smem:[#allocation3 + $0x87]] }
  0x2e   :  { %86 = vst.msk [vmem:[#allocation2 + $0x7] sm:$0x1] %vm50_vm0, %v85_v25  ;;  %v94_v28 = vmul.f32 %v1143_v26, %v93_v27  ;;  %v98_v29 = vld [vmem:[%s97_s10] sm:$0x1]  ;;  %s102_s19 = scalar_lea.vmem %s1741_s2, %s1493_s21  ;;  %v1158_v14 = vld [vmem:[%s1741_s2 + $0x168] ss:$0 sm:$0xff] }
  0x2f   :  { %v99_v30 = vmul.f32 %v1143_v26, %v98_v29  ;;  %v103_v31 = vld [vmem:[%s102_s19] sm:$0x1]  ;;  %s107_s15 = scalar_lea.vmem %s1741_s2, %s1500_s1  ;;  %v1159_v19 = vld [vmem:[%s1741_s2 + $0x16b] ss:$0 sm:$0xff]  ;;  %v1160_v22 = vld [vmem:[%s1741_s2 + $0x16e] ss:$0 sm:$0xff] }
  0x30   :  { %95 = vst.msk [vmem:[#allocation2 + $0x8] sm:$0x1] %vm50_vm0, %v94_v28  ;;  %v104_v32 = vmul.f32 %v1143_v26, %v103_v31  ;;  %v108_v33 = vld [vmem:[%s107_s15] sm:$0x1]  ;;  %s112_s0 = scalar_lea.vmem %s1741_s2, %s1148_s27  ;;  %v458_v28 = vld [vmem:[%s1741_s2 + $0xf8] sm:$0xff] }
  0x31   :  { %100 = vst.msk [vmem:[#allocation2 + $0x9] sm:$0x1] %vm50_vm0, %v99_v30  ;;  %v109_v34 = vmul.f32 %v1143_v26, %v108_v33  ;;  %v113_v35 = vld [vmem:[%s112_s0] sm:$0x1]  ;;  %s117_s24 = scalar_lea.vmem %s1741_s2, %s1149_s5 }
  0x32   :  { %105 = vst.msk [vmem:[#allocation2 + $0xa] sm:$0x1] %vm50_vm0, %v104_v32  ;;  %v114_v36 = vmul.f32 %v1143_v26, %v113_v35  ;;  %v118_v37 = vld [vmem:[%s117_s24] sm:$0x1]  ;;  %s122_s25 = scalar_lea.vmem %s1741_s2, %s1150_s11  ;;  %v457_v35 = vld [vmem:[%s1741_s2 + $0xf0] sm:$0xff] }
  0x33   :  { %110 = vst.msk [vmem:[#allocation2 + $0xb] sm:$0x1] %vm50_vm0, %v109_v34  ;;  %v119_v38 = vmul.f32 %v1143_v26, %v118_v37  ;;  %v123_v39 = vld [vmem:[%s122_s25] sm:$0x1]  ;;  %s127_s29 = scalar_lea.vmem %s1741_s2, %s1151_s14 }
  0x34   :  { %115 = vst.msk [vmem:[#allocation2 + $0xc] sm:$0x1] %vm50_vm0, %v114_v36  ;;  %v124_v40 = vmul.f32 %v1143_v26, %v123_v39  ;;  %v128_v41 = vld [vmem:[%s127_s29] sm:$0x1] }
  0x35   :  { %v131_v42 = vld [vmem:[#allocation2] sm:$0xff]  ;;  %120 = vst.msk [vmem:[#allocation2 + $0xd] sm:$0x1] %vm50_vm0, %v119_v38  ;;  %v129_v43 = vmul.f32 %v1143_v26, %v128_v41 }
  0x36   :  { %1250 = vmatprep.mubr.msk.f32.mxu0 %vm166_vm1, %v131_v42  ;;  %125 = vst.msk [vmem:[#allocation2 + $0xe] sm:$0x1] %vm50_vm0, %v124_v40  ;;  %v141_v46 = vrot.slane %v131_v42, 7  ;;  %v148_v47 = vrot.slane %v131_v42, 1  ;;  %v456_v40 = vld [vmem:[%s1741_s2 + $0xe8] sm:$0xff] }
  0x37   :  { %130 = vst.msk [vmem:[#allocation2 + $0xf] sm:$0x1] %vm50_vm0, %v129_v43  ;;  %v743_v43 = vld [vmem:[%s1741_s2 + $0x140] sm:$0xff] }
  0x3e   :  { %v132_v48 = vld [vmem:[#allocation2 + $0x8] sm:$0xff] }
  0x3f   :  { %v142_v50 = vrot.slane %v132_v48, 7  ;;  %v149_v51 = vrot.slane %v132_v48, 1  ;;  %1251 = vmatmul.mubr.msk.f32.vlgmr.msra.gmra.mxu0 %vm166_vm1, %v132_v48  ;;  %v740_v48 = vld [vmem:[%s1741_s2 + $0x128] sm:$0xff] }
  0x40   :  { %1265 = vmatpush3.msra.mxu0 %v1455_v8 }
  0x41   :  { %1266 = vmatprep.subr.mxu0 %v164_v49  ;;  %v144_v53 = vsel %vm143_vm2, %v141_v46, %v142_v50  ;;  %v145_v54 = vsel %vm143_vm2, %v142_v50, %v141_v46  ;;  %v150_v55 = vsel %vm136_vm3, %v148_v47, %v149_v51  ;;  %v151_v56 = vsel %vm136_vm3, %v149_v51, %v148_v47  ;;  %v741_v46 = vld [vmem:[%s1741_s2 + $0x130] sm:$0xff]  ;;  %v739_v47 = vld [vmem:[%s1741_s2 + $0x120] sm:$0xff] }
  0x42   :  { %1267 = vmatpush3.msra.mxu0 %v164_v49  ;;  %v146_v57 = vsel %vm135_vm4, %v145_v54, 0.0  ;;  %v147_v58 = vsel %vm135_vm4, %v144_v53, 0.0  ;;  %v152_v60 = vsel %vm136_vm3, %v150_v55, 0.0  ;;  %v153_v61 = vsel %vm136_vm3, %v151_v56, 0.0  ;;  %v738_v49 = vld [vmem:[%s1741_s2 + $0x118] sm:$0xff]  ;;  %v747_v50 = vld [vmem:[%s1741_s2 + $0x160] sm:$0xff] }
  0x43   :  { %1261 = vmatprep.mubr.msk.f32.mxu1 %vm166_vm1, %v146_v57  ;;  %1268 = vmatprep.subr.mxu0 %v163_v52  ;;  %v737_v51 = vld [vmem:[%s1741_s2 + $0x110] sm:$0xff] }
  0x44   :  { %1262 = vmatmul.mubr.msk.f32.vlgmr.msra.gmra.mxu1 %vm166_vm1, %v147_v58  ;;  %1269 = vmatpush3.msra.mxu0 %v163_v52  ;;  %v736_v52 = vld [vmem:[%s1741_s2 + $0x108] sm:$0xff] }
  0x45   :  { %1270 = vmatprep.subr.mxu0 %v162_v59  ;;  %1272 = vmatprep.mubr.msk.f32.mxu0 %vm166_vm1, %v152_v60  ;;  %v1167_v60 = vld [vmem:[%s1741_s2 + $0x169] ss:$0 sm:$0xff] }
  0x46   :  { %1271 = vmatpush3.msra.mxu0 %v162_v59  ;;  %1276 = vmatpush3.msra.mxu1 %v455_v62 }
  0x47   :  { %1273 = vmatmul.mubr.msk.f32.vlgmr.msra.gmra.mxu0 %vm166_vm1, %v153_v61  ;;  %1277 = vmatprep.subr.mxu1 %v454_v63 }
  0x48   :  { %1278 = vmatpush3.msra.mxu1 %v454_v63  ;;  %1286 = vmatprep.subr.mxu0 %v451_v1 }
  0x49   :  { %1279 = vmatprep.subr.mxu1 %v453_v0  ;;  %1287 = vmatpush3.msra.mxu0 %v451_v1  ;;  %v1168_v1 = vld [vmem:[%s1741_s2 + $0x16c] ss:$0 sm:$0xff] }
  0x4a   :  { %1280 = vmatpush3.msra.mxu1 %v453_v0  ;;  %1288 = vmatprep.subr.mxu0 %v450_v3 }
  0x4b   :  { %1281 = vmatprep.subr.mxu1 %v452_v2  ;;  %1289 = vmatpush3.msra.mxu0 %v450_v3 }
  0x4c   :  { %1282 = vmatpush3.msra.mxu1 %v452_v2  ;;  %1290 = vmatprep.subr.mxu0 %v449_v5 }
  0x4d   :  { %1297 = vmatprep.subr.mxu1 %v459_v4  ;;  %1291 = vmatpush3.msra.mxu0 %v449_v5 }
  0x4e   :  { %1292 = vmatprep.subr.mxu0 %v448_v6 }
  0x4f   :  { %1293 = vmatpush3.msra.mxu0 %v448_v6 }
  0x50   :  { %1308 = vmatprep.subr.mxu0 %v743_v43 }
  0xff   :  { %v1252_v7 = vpop.f32.mrf.mxu0 }
 0x101   :  { %v239_v9 = vpop.f32.mrf.mxu0 }
 0x104   :  { %v1263_v8 = vpop.f32.mrf.mxu1 }
 0x105   :  { %v326_v10 = vadd.f32 %v1263_v8, %v1252_v7 }
 0x106   :  { %v320_v11 = vpop.f32.mrf.mxu1 }
 0x107   :  { %v321_v12 = vadd.f32 %v320_v11, %v239_v9  ;;  %v1274_v13 = vpop.f32.mrf.mxu0 }
 0x108   :  { %v411_v15 = vadd.f32 %v1274_v13, %v326_v10  ;;  %v746_v10 = vld [vmem:[%s1741_s2 + $0x158] sm:$0xff] }
 0x109   :  { %v401_v16 = vpop.f32.mrf.mxu0 }
 0x10a   :  { %v418_v17 = vadd.f32 %v1158_v14, %v411_v15  ;;  %v410_v18 = vadd.f32 %v401_v16, %v321_v12 }
 0x10c   :  { %v420_v20 = vmax.f32 %v418_v17, 0.0  ;;  %v417_v21 = vadd.f32 %v1158_v14, %v410_v18  ;;  %v745_v14 = vld [vmem:[%s1741_s2 + $0x150] sm:$0xff] }
 0x10e   :  { %v427_v23 = vmul.f32 %v1159_v19, %v420_v20  ;;  %v419_v24 = vmax.f32 %v417_v21, 0.0  ;;  %v1019_v21 = vld [vmem:[%s1742_s3 + $0x18] sm:$0xff] }
 0x110   :  { %v434_v25 = vadd.f32 %v1160_v22, %v427_v23  ;;  %v426_v26 = vmul.f32 %v1159_v19, %v419_v24  ;;  %v744_v19 = vld [vmem:[%s1741_s2 + $0x148] sm:$0xff]  ;;  %v1016_v23 = vld [vmem:[%s1742_s3] sm:$0xff] }
 0x112   :  { %v433_v27 = vadd.f32 %v1160_v22, %v426_v26  ;;  %v436_v30 = vrot.slane %v434_v25, 6  ;;  %v443_v32 = vrot.slane %v434_v25, 2  ;;  %v1018_v22 = vld [vmem:[%s1742_s3 + $0x10] sm:$0xff] }
 0x114   :  { %1283 = vmatprep.mubr.msk.f32.mxu1 %vm166_vm1, %v433_v27  ;;  %v435_v29 = vrot.slane %v433_v27, 6  ;;  %v442_v31 = vrot.slane %v433_v27, 2 }
 0x115   :  { %1284 = vmatmul.mubr.msk.f32.vlgmr.msra.gmra.mxu1 %vm166_vm1, %v434_v25 }
 0x116   :  { %1298 = vmatpush3.msra.mxu1 %v459_v4  ;;  %v438_v33 = vsel %vm437_vm6, %v435_v29, %v436_v30  ;;  %v439_v34 = vsel %vm437_vm6, %v436_v30, %v435_v29  ;;  %v444_v36 = vsel %vm138_vm7, %v442_v31, %v443_v32  ;;  %v445_v41 = vsel %vm138_vm7, %v443_v32, %v442_v31  ;;  %v1169_v4 = vld [vmem:[%s1741_s2 + $0x16f] ss:$0 sm:$0xff]  ;;  %v1176_v31 = vld [vmem:[%s1741_s2 + $0x16a] ss:$0 sm:$0xff] }
 0x117   :  { %1299 = vmatprep.subr.mxu1 %v458_v28  ;;  %v440_v37 = vsel %vm137_vm5, %v439_v34, 0.0  ;;  %v441_v38 = vsel %vm137_vm5, %v438_v33, 0.0  ;;  %v446_v39 = vsel %vm138_vm7, %v444_v36, 0.0  ;;  %v447_v42 = vsel %vm138_vm7, %v445_v41, 0.0  ;;  %v1178_v41 = vld [vmem:[%s1741_s2 + $0x170] ss:$0 sm:$0xff] }
 0x118   :  { %1300 = vmatpush3.msra.mxu1 %v458_v28  ;;  %1294 = vmatprep.mubr.msk.f32.mxu0 %vm166_vm1, %v440_v37  ;;  %v1177_v37 = vld [vmem:[%s1741_s2 + $0x16d] ss:$0 sm:$0xff] }
 0x119   :  { %1301 = vmatprep.subr.mxu1 %v457_v35  ;;  %1305 = vmatprep.mubr.msk.f32.mxu1 %vm166_vm1, %v446_v39 }
 0x11a   :  { %1295 = vmatmul.mubr.msk.f32.vlgmr.msra.gmra.mxu0 %vm166_vm1, %v441_v38  ;;  %1302 = vmatpush3.msra.mxu1 %v457_v35 }
 0x11b   :  { %1303 = vmatprep.subr.mxu1 %v456_v40  ;;  %1309 = vmatpush3.msra.mxu0 %v743_v43 }
 0x11c   :  { %1304 = vmatpush3.msra.mxu1 %v456_v40  ;;  %1310 = vmatprep.subr.mxu0 %v742_v44 }
 0x11d   :  { %1306 = vmatmul.mubr.msk.f32.vlgmr.msra.gmra.mxu1 %vm166_vm1, %v447_v42  ;;  %1311 = vmatpush3.msra.mxu0 %v742_v44 }
 0x11e   :  { %1312 = vmatprep.subr.mxu0 %v741_v46  ;;  %1319 = vmatprep.subr.mxu1 %v739_v47 }
 0x11f   :  { %1313 = vmatpush3.msra.mxu0 %v741_v46  ;;  %1320 = vmatpush3.msra.mxu1 %v739_v47  ;;  %v1179_v46 = vld [vmem:[%s1742_s3 + $0x20] ss:$0 sm:$0xff] }
 0x120   :  { %1314 = vmatprep.subr.mxu0 %v740_v48  ;;  %1321 = vmatprep.subr.mxu1 %v738_v49 }
 0x121   :  { %1315 = vmatpush3.msra.mxu0 %v740_v48  ;;  %1322 = vmatpush3.msra.mxu1 %v738_v49 }
 0x122   :  { %1330 = vmatprep.subr.mxu0 %v747_v50  ;;  %1323 = vmatprep.subr.mxu1 %v737_v51 }
 0x123   :  { %1324 = vmatpush3.msra.mxu1 %v737_v51 }
 0x124   :  { %1325 = vmatprep.subr.mxu1 %v736_v52 }
 0x125   :  { %1326 = vmatpush3.msra.mxu1 %v736_v52 }
 0x126   :  { %1341 = vmatprep.subr.mxu1 %v1019_v21 }
 0x1d5   :  { %v1285_v53 = vpop.f32.mrf.mxu1 }
 0x1d7   :  { %v532_v55 = vpop.f32.mrf.mxu1 }
 0x1da   :  { %v1296_v54 = vpop.f32.mrf.mxu0 }
 0x1db   :  { %v619_v56 = vadd.f32 %v1296_v54, %v1285_v53 }
 0x1dc   :  { %v613_v57 = vpop.f32.mrf.mxu0 }
 0x1dd   :  { %v614_v58 = vadd.f32 %v613_v57, %v532_v55  ;;  %v1307_v59 = vpop.f32.mrf.mxu1 }
 0x1de   :  { %v704_v61 = vadd.f32 %v1307_v59, %v619_v56 }
 0x1df   :  { %v694_v62 = vpop.f32.mrf.mxu1 }
 0x1e0   :  { %v711_v63 = vadd.f32 %v1167_v60, %v704_v61  ;;  %v703_v0 = vadd.f32 %v694_v62, %v614_v58 }
 0x1e2   :  { %v713_v2 = vmax.f32 %v711_v63, 0.0  ;;  %v710_v3 = vadd.f32 %v1167_v60, %v703_v0 }
 0x1e4   :  { %v720_v5 = vmul.f32 %v1168_v1, %v713_v2  ;;  %v712_v6 = vmax.f32 %v710_v3, 0.0 }
 0x1e6   :  { %v727_v7 = vadd.f32 %v1169_v4, %v720_v5  ;;  %v719_v8 = vmul.f32 %v1168_v1, %v712_v6 }
 0x1e8   :  { %v726_v9 = vadd.f32 %v1169_v4, %v719_v8  ;;  %v729_v12 = vrot.slane %v727_v7, 4 }
 0x1ea   :  { %1316 = vmatprep.mubr.msk.f32.mxu0 %vm166_vm1, %v726_v9  ;;  %v728_v11 = vrot.slane %v726_v9, 4 }
 0x1eb   :  { %1317 = vmatmul.mubr.msk.f32.vlgmr.msra.gmra.mxu0 %vm166_vm1, %v727_v7 }
 0x1ec   :  { %1331 = vmatpush3.msra.mxu0 %v747_v50  ;;  %v731_v13 = vsel %vm140_vm8, %v729_v12, %v728_v11  ;;  %v730_v15 = vsel %vm140_vm8, %v728_v11, %v729_v12 }
 0x1ed   :  { %1332 = vmatprep.subr.mxu0 %v746_v10  ;;  %v732_v16 = vsel %vm139_vm9, %v731_v13, 0.0  ;;  %v733_v17 = vsel %vm139_vm9, %v730_v15, 0.0  ;;  %v734_v18 = vsel %vm140_vm8, %v730_v15, 0.0  ;;  %v735_v20 = vsel %vm140_vm8, %v731_v13, 0.0 }
 0x1ee   :  { %1333 = vmatpush3.msra.mxu0 %v746_v10  ;;  %1327 = vmatprep.mubr.msk.f32.mxu1 %vm166_vm1, %v732_v16 }
 0x1ef   :  { %1334 = vmatprep.subr.mxu0 %v745_v14  ;;  %1338 = vmatprep.mubr.msk.f32.mxu0 %vm166_vm1, %v734_v18 }
 0x1f0   :  { %1328 = vmatmul.mubr.msk.f32.vlgmr.msra.gmra.mxu1 %vm166_vm1, %v733_v17  ;;  %1335 = vmatpush3.msra.mxu0 %v745_v14 }
 0x1f1   :  { %1336 = vmatprep.subr.mxu0 %v744_v19  ;;  %1342 = vmatpush3.msra.mxu1 %v1019_v21 }
 0x1f2   :  { %1337 = vmatpush3.msra.mxu0 %v744_v19  ;;  %1343 = vmatprep.subr.mxu1 %v1018_v22 }
 0x1f3   :  { %1339 = vmatmul.mubr.msk.f32.vlgmr.msra.gmra.mxu0 %vm166_vm1, %v735_v20  ;;  %1344 = vmatpush3.msra.mxu1 %v1018_v22 }
 0x1f4   :  { %1345 = vmatprep.subr.mxu1 %v1017_v45 }
 0x1f5   :  { %1346 = vmatpush3.msra.mxu1 %v1017_v45 }
 0x1f6   :  { %1347 = vmatprep.subr.mxu1 %v1016_v23 }
 0x1f7   :  { %1348 = vmatpush3.msra.mxu1 %v1016_v23 }
 0x2ab   :  { %v1318_v24 = vpop.f32.mrf.mxu0 }
 0x2ad   :  { %v820_v26 = vpop.f32.mrf.mxu0 }
 0x2b0   :  { %v1329_v25 = vpop.f32.mrf.mxu1 }
 0x2b1   :  { %v907_v27 = vadd.f32 %v1329_v25, %v1318_v24 }
 0x2b2   :  { %v901_v28 = vpop.f32.mrf.mxu1 }
 0x2b3   :  { %v902_v29 = vadd.f32 %v901_v28, %v820_v26  ;;  %v1340_v30 = vpop.f32.mrf.mxu0 }
 0x2b4   :  { %v992_v32 = vadd.f32 %v1340_v30, %v907_v27 }
 0x2b5   :  { %v982_v33 = vpop.f32.mrf.mxu0 }
 0x2b6   :  { %v999_v34 = vadd.f32 %v1176_v31, %v992_v32  ;;  %v991_v35 = vadd.f32 %v982_v33, %v902_v29 }
 0x2b8   :  { %v1001_v36 = vmax.f32 %v999_v34, 0.0  ;;  %v998_v38 = vadd.f32 %v1176_v31, %v991_v35 }
 0x2ba   :  { %v1000_v39 = vmax.f32 %v998_v38, 0.0  ;;  %v1008_v40 = vmul.f32 %v1177_v37, %v1001_v36 }
 0x2bc   :  { %v1007_v42 = vmul.f32 %v1177_v37, %v1000_v39  ;;  %v1015_v44 = vadd.f32 %v1178_v41, %v1008_v40 }
 0x2be   :  { %v1014_v43 = vadd.f32 %v1178_v41, %v1007_v42 }
 0x2c0   :  { %1349 = vmatprep.mubr.msk.f32.mxu1 %vm166_vm1, %v1014_v43 }
 0x2c1   :  { %1350 = vmatmul.mubr.msk.f32.vlgmr.msra.gmra.mxu1 %vm166_vm1, %v1015_v44 }
 0x381   :  { %v1351_v47 = vpop.f32.mrf.mxu1 }
 0x382   :  { %v1103_v48 = vadd.f32 %v1351_v47, %v1179_v46 }
 0x383   :  { %v1097_v49 = vpop.f32.mrf.mxu1 }
 0x384   :  { %1107 = vst [vmem:[%s1743_s4 + $0x8] sm:$0xff] %v1103_v48  ;;  %v1098_v50 = vadd.f32 %v1179_v46, %v1097_v49 }
 0x386   :  { %1106 = vst [vmem:[%s1743_s4] sm:$0xff] %v1098_v50 }
 0x387   :  { %1112 = vsyncpa [#allocation4], 1 }
 0x388   :  { %1113 = vsyncpa [#allocation6], 1 }

</bundles_post_ra>
